<compile_context>
chip_gen: v6e
topology: v6e:2x2x1
jax: 0.10.0
libtpu: 0.0.40
codegen_flags: <defaults>
</compile_context>

<pallas_src>
import jax
import jax.numpy as jnp
import numpy as np
from jax import lax
from jax.experimental import pallas as pl
from jax.experimental.pallas import tpu as pltpu


def _cgemm_kernel(a_ref, w_ref, o_ref, acc_ref):
    # One (TM, TK) x (TK, NOUT_pad) slice of the fused complex GEMM,
    # accumulated in float32 across the innermost (arbitrary) K grid axis.
    @pl.when(pl.program_id(1) == 0)
    def _init():
        acc_ref[...] = jnp.zeros_like(acc_ref)

    acc_ref[...] += jnp.dot(a_ref[...], w_ref[...],
                            preferred_element_type=jnp.float32)

    @pl.when(pl.program_id(1) == pl.num_programs(1) - 1)
    def _store():
        o_ref[...] = acc_ref[...]


def _round_up(v, m):
    return ((v + m - 1) // m) * m


def _dilate_pad_nhwc(x_nchw, stride, pad_h, pad_w):
    # (N, C, H, W) -> NHWC with (stride-1) interior zeros and edge padding.
    x = jnp.transpose(x_nchw, (0, 2, 3, 1))
    cfg = ((0, 0, 0),
           (pad_h[0], pad_h[1], stride - 1),
           (pad_w[0], pad_w[1], stride - 1),
           (0, 0, 0))
    return lax.pad(x, jnp.zeros((), x.dtype), cfg)


def _choose_tm(m):
    # Prefer: minimal zero-row padding, >= 4 grid steps (v7x: 2 TensorCores +
    # pipeline depth), then the largest tile (per-step overhead ~0.35us).
    if m <= 128:
        return max(8, _round_up(m, 8))
    best_key, best_tm = None, 128
    for tm in (1024, 512, 256, 128):
        steps = -(-m // tm)
        pad = steps * tm - m
        key = (pad, 0 if steps >= 4 else 1, -tm)
        if best_key is None or key < best_key:
            best_key, best_tm = key, tm
    return best_tm


def complex_conv_transpose2d(x, w, stride=1, padding=0, output_padding=0,
                             dilation=1, compute_dtype=jnp.bfloat16):
    """x: (N, Cin, H, W) complex64; w: (Cin, Cout, Kh, Kw) complex64
    (PyTorch ConvTranspose2d weight layout). groups=1, bias=False,
    padding_mode='zeros'.  `compute_dtype` is the MXU streaming dtype
    (accumulation is always float32); use jnp.float32 for exact complex64
    semantics."""
    N, Cin, H, W = x.shape
    _, Cout, Kh, Kw = w.shape
    if output_padding >= stride and output_padding >= dilation:
        raise ValueError("output_padding must be smaller than stride or dilation")

    pad_lo_h = dilation * (Kh - 1) - padding
    pad_hi_h = pad_lo_h + output_padding
    pad_lo_w = dilation * (Kw - 1) - padding
    pad_hi_w = pad_lo_w + output_padding

    cdt = jnp.dtype(compute_dtype)

    # Cast to the streaming dtype *before* any large intermediate is built so
    # every wrapper-side HBM pass already runs at the narrow width.
    xr = jnp.real(x).astype(cdt)
    xi = jnp.imag(x).astype(cdt)
    xr_p = _dilate_pad_nhwc(xr, stride, (pad_lo_h, pad_hi_h), (pad_lo_w, pad_hi_w))
    xi_p = _dilate_pad_nhwc(xi, stride, (pad_lo_h, pad_hi_h), (pad_lo_w, pad_hi_w))

    _, Hp, Wp, _ = xr_p.shape
    OH = Hp - dilation * (Kh - 1)
    OW = Wp - dilation * (Kw - 1)

    # Fused im2col for BOTH complex parts in a single stack -> one
    # materialized (M, 2K) buffer, columns ordered (part, kh, kw, cin).
    taps = []
    for xp in (xr_p, xi_p):
        for i in range(Kh):
            for j in range(Kw):
                hi, wj = i * dilation, j * dilation
                taps.append(xp[:, hi:hi + OH, wj:wj + OW, :])
    a = jnp.stack(taps, axis=3).reshape(N * OH * OW, 2 * Kh * Kw * Cin)

    K = Cin * Kh * Kw
    K2 = 2 * K
    M = N * OH * OW
    NOUT = 2 * Cout
    NOUT_pad = _round_up(NOUT, 128)          # lane-dense (unmasked) stores

    # Transposed-conv kernel -> equivalent forward-conv kernel, rows ordered
    # (part, kh, kw, cin) to match A's columns:
    #   w_conv[cout, cin, i, j] = w[cin, cout, Kh-1-i, Kw-1-j]
    w_flip = jnp.flip(w, axis=(2, 3))                          # (Cin, Cout, Kh, Kw)
    w_mat = w_flip.transpose(2, 3, 0, 1).reshape(K, Cout)      # complex (K, Cout)
    wr = jnp.real(w_mat).astype(jnp.float32)
    wi = jnp.imag(w_mat).astype(jnp.float32)
    w_stack = jnp.concatenate(
        [jnp.concatenate([wr, wi], axis=1),
         jnp.concatenate([-wi, wr], axis=1)], axis=0)          # (2K, 2*Cout)

    # Contraction tiling: keep the natural K2 (full-extent block, no zero
    # columns) when it is small; tile + accumulate for large Cin*Kh*Kw so the
    # per-step working set stays bounded on v7x's 64 MiB VMEM.
    sublane = 8 * (4 // cdt.itemsize)        # native 2nd-minor tile: f32->8, bf16->16
    if K2 <= 1024:
        K2_pad = _round_up(K2, sublane)
        TK = K2_pad
    else:
        TK = 512
        K2_pad = _round_up(K2, TK)

    TM = _choose_tm(M)
    M_pad = _round_up(M, TM)

    # Only padding left on the big operand: the M rows (+ a few alignment
    # columns), fused by XLA with the stack/cast above, so A is materialized
    # exactly once at the streaming width.
    a = jnp.pad(a, ((0, M_pad - M), (0, K2_pad - K2)))
    w_stack = jnp.pad(w_stack, ((0, K2_pad - K2), (0, NOUT_pad - NOUT))).astype(cdt)

    grid = (M_pad // TM, K2_pad // TK)

    # Working-set-derived VMEM budget (2x pipeline buffers + accumulator),
    # kept well below v7x's 64 MiB physical per-core VMEM.
    work = (2 * (TM * TK * cdt.itemsize + TK * NOUT_pad * cdt.itemsize
                 + TM * NOUT_pad * 4) + TM * NOUT_pad * 4)
    vmem_limit = int(min(48 * 2 ** 20, max(32 * 2 ** 20, 2 * work)))

    out = pl.pallas_call(
        _cgemm_kernel,
        out_shape=jax.ShapeDtypeStruct((M_pad, NOUT_pad), jnp.float32),
        grid_spec=pltpu.PrefetchScalarGridSpec(
            num_scalar_prefetch=0,
            grid=grid,
            in_specs=[
                pl.BlockSpec((TM, TK), lambda m, k: (m, k)),
                # Constant across the (parallel) M axis -> re-fetched only
                # when the K step changes; for very large Cin*Cout this block
                # could additionally be single-buffered to save VMEM headroom.
                pl.BlockSpec((TK, NOUT_pad), lambda m, k: (k, 0)),
            ],
            out_specs=pl.BlockSpec((TM, NOUT_pad), lambda m, k: (m, 0)),
            scratch_shapes=[pltpu.VMEM((TM, NOUT_pad), jnp.float32)],
        ),
        compiler_params=pltpu.CompilerParams(
            dimension_semantics=("parallel", "arbitrary"),
            vmem_limit_bytes=vmem_limit),
    )(a, w_stack)

    # Epilogue: single slice + single NHWC->NCHW pass for both parts.
    out = out[:M, :NOUT].reshape(N, OH, OW, NOUT)
    out = jnp.moveaxis(out, 3, 1)                              # (N, 2*Cout, OH, OW)
    return lax.complex(out[:, :Cout], out[:, Cout:])


def _real_convT_ref(x, w, stride, padding, output_padding, dilation):
    # Pure-JAX reference for a real ConvTranspose2d (PyTorch semantics).
    Kh, Kw = w.shape[2], w.shape[3]
    w_conv = jnp.flip(w, axis=(2, 3)).transpose(1, 0, 2, 3)    # (Cout, Cin, Kh, Kw)
    plo_h = dilation * (Kh - 1) - padding
    plo_w = dilation * (Kw - 1) - padding
    return lax.conv_general_dilated(
        x, w_conv,
        window_strides=(1, 1),
        padding=[(plo_h, plo_h + output_padding),
                 (plo_w, plo_w + output_padding)],
        lhs_dilation=(stride, stride),
        rhs_dilation=(dilation, dilation),
        dimension_numbers=("NCHW", "OIHW", "NCHW"),
        precision=lax.Precision.HIGHEST,
    )


if __name__ == "__main__":
    # Small shapes consistent with the module: batch=2, Cin=4, Cout=8,
    # spatial=16, kernel=3, dilation=1, groups=1, bias=False.  The module's
    # default output_padding=1 requires stride>1, so use stride=2, padding=1,
    # output_padding=1 (a standard 2x upsampling transposed conv).
    N, Cin, Cout, H, W, Ksz = 2, 4, 8, 16, 16, 3
    stride, padding, output_padding, dilation = 2, 1, 1, 1

    key = jax.random.PRNGKey(0)
    kxr, kxi, kwr, kwi = jax.random.split(key, 4)

    xr = jax.random.normal(kxr, (N, Cin, H, W), dtype=jnp.float32)
    xi = jax.random.normal(kxi, (N, Cin, H, W), dtype=jnp.float32)
    x = lax.complex(xr, xi)                  # complex64 NCHW (torch cfloat)

    # nn.ConvTranspose2d weight layout: (Cin, Cout/groups, Kh, Kw);
    # uniform(-k, k) init mimicking PyTorch.
    fan = Cout * Ksz * Ksz
    bound = 1.0 / np.sqrt(fan)
    wr = jax.random.uniform(kwr, (Cin, Cout, Ksz, Ksz), jnp.float32, -bound, bound)
    wi = jax.random.uniform(kwi, (Cin, Cout, Ksz, Ksz), jnp.float32, -bound, bound)
    w = lax.complex(wr, wi)

    # Reference: complex transposed conv = 4 real transposed convs.
    ref_r = (_real_convT_ref(xr, wr, stride, padding, output_padding, dilation)
             - _real_convT_ref(xi, wi, stride, padding, output_padding, dilation))
    ref_i = (_real_convT_ref(xr, wi, stride, padding, output_padding, dilation)
             + _real_convT_ref(xi, wr, stride, padding, output_padding, dilation))
    ref = np.asarray(lax.complex(ref_r, ref_i))

    OH = (H - 1) * stride - 2 * padding + dilation * (Ksz - 1) + output_padding + 1

    # 1) Exact complex64 semantics: float32 streaming dtype, tight tolerance.
    out_f32 = jax.block_until_ready(
        complex_conv_transpose2d(x, w, stride=stride, padding=padding,
                                 output_padding=output_padding,
                                 dilation=dilation,
                                 compute_dtype=jnp.float32))
    assert out_f32.shape == (N, Cout, OH, OH), out_f32.shape
    assert out_f32.dtype == jnp.complex64
    np.testing.assert_allclose(np.asarray(out_f32), ref, rtol=1e-4, atol=1e-4)

    # 2) Default perf path: bfloat16 streaming, float32 accumulation
    #    (bf16-appropriate tolerance against the f32 HIGHEST reference).
    out_bf16 = jax.block_until_ready(
        complex_conv_transpose2d(x, w, stride=stride, padding=padding,
                                 output_padding=output_padding,
                                 dilation=dilation,
                                 compute_dtype=jnp.bfloat16))
    assert out_bf16.shape == (N, Cout, OH, OH), out_bf16.shape
    np.testing.assert_allclose(np.asarray(out_bf16), ref, rtol=2e-2, atol=2e-2)

    print("KERNEL_OK")
</pallas_src>

<mosaic_0001>
module attributes {stable_mosaic.version = 11 : i64} {
  func.func @_cgemm_kernel(%arg0: i32, %arg1: i32, %arg2: memref<512x72xf32, #tpu.memory_space<vmem>>, %arg3: memref<72x128xf32, #tpu.memory_space<vmem>>, %arg4: memref<512x128xf32, #tpu.memory_space<vmem>>, %arg5: memref<512x128xf32, #tpu.memory_space<vmem>>) attributes {dimension_semantics = [#tpu.dimension_semantics<parallel>, #tpu.dimension_semantics<arbitrary>], iteration_bounds = array<i64: 4, 1>, scalar_prefetch = 0 : i64, scratch_operands = 1 : i64, tpu.core_type = #tpu.core_type<tc>, window_params = [{transform_indices = @transform_0, window_bounds = array<i64: 512, 72>}, {transform_indices = @transform_1, window_bounds = array<i64: 72, 128>}, {transform_indices = @transform_2, window_bounds = array<i64: 512, 128>}]} {
    %c0_i32 = arith.constant 0 : i32
    %0 = arith.cmpi eq, %arg1, %c0_i32 : i32
    %1 = arith.extui %0 : i1 to i32
    %c0_i32_0 = arith.constant 0 : i32
    %2 = arith.cmpi ne, %1, %c0_i32_0 : i32
    scf.if %2 {
      %cst_10 = arith.constant 0.000000e+00 : f32
      %12 = vector.broadcast %cst_10 : f32 to vector<512x128xf32>
      %c0_11 = arith.constant 0 : index
      %c0_12 = arith.constant 0 : index
      %13 = vector.load %arg5[%c0_11, %c0_12] : memref<512x128xf32, #tpu.memory_space<vmem>>, vector<512x128xf32>
      tpu.vector_store %arg5[%c0_11, %c0_12], %12 {strides = array<i32>} : memref<512x128xf32, #tpu.memory_space<vmem>>, vector<512x128xf32>,
    } else {
    }
    %c0 = arith.constant 0 : index
    %c0_1 = arith.constant 0 : index
    %3 = vector.load %arg5[%c0, %c0_1] : memref<512x128xf32, #tpu.memory_space<vmem>>, vector<512x128xf32>
    %c0_2 = arith.constant 0 : index
    %c0_3 = arith.constant 0 : index
    %4 = vector.load %arg2[%c0_2, %c0_3] : memref<512x72xf32, #tpu.memory_space<vmem>>, vector<512x72xf32>
    %c0_4 = arith.constant 0 : index
    %c0_5 = arith.constant 0 : index
    %5 = vector.load %arg3[%c0_4, %c0_5] : memref<72x128xf32, #tpu.memory_space<vmem>>, vector<72x128xf32>
    %cst = arith.constant dense<0.000000e+00> : vector<512x128xf32>
    %6 = tpu.matmul %4, %5, %cst {dimension_numbers = #tpu.dot_dimension_numbers<[1], [0], [0], [1], [0, 0, 1, 1], [], []>} : vector<512x72xf32>, vector<72x128xf32>, vector<512x128xf32> -> vector<512x128xf32>
    %7 = arith.addf %3, %6 : vector<512x128xf32>
    %c0_6 = arith.constant 0 : index
    %c0_7 = arith.constant 0 : index
    %8 = vector.load %arg5[%c0_6, %c0_7] : memref<512x128xf32, #tpu.memory_space<vmem>>, vector<512x128xf32>
    tpu.vector_store %arg5[%c0_6, %c0_7], %7 {strides = array<i32>} : memref<512x128xf32, #tpu.memory_space<vmem>>, vector<512x128xf32>,
    %c0_i32_8 = arith.constant 0 : i32
    %9 = arith.cmpi eq, %arg1, %c0_i32_8 : i32
    %10 = arith.extui %9 : i1 to i32
    %c0_i32_9 = arith.constant 0 : i32
    %11 = arith.cmpi ne, %10, %c0_i32_9 : i32
    scf.if %11 {
      %c0_10 = arith.constant 0 : index
      %c0_11 = arith.constant 0 : index
      %12 = vector.load %arg5[%c0_10, %c0_11] : memref<512x128xf32, #tpu.memory_space<vmem>>, vector<512x128xf32>
      %c0_12 = arith.constant 0 : index
      %c0_13 = arith.constant 0 : index
      %13 = vector.load %arg4[%c0_12, %c0_13] : memref<512x128xf32, #tpu.memory_space<vmem>>, vector<512x128xf32>
      tpu.vector_store %arg4[%c0_12, %c0_13], %12 {strides = array<i32>} : memref<512x128xf32, #tpu.memory_space<vmem>>, vector<512x128xf32>,
    } else {
    }
    return
  }
  func.func @transform_0(%arg0: i32, %arg1: i32) -> (i32, i32) {
    %c0_i32 = arith.constant 0 : i32
    return %arg0, %arg1 : i32, i32
  }
  func.func @transform_1(%arg0: i32, %arg1: i32) -> (i32, i32) {
    %c0_i32 = arith.constant 0 : i32
    %c0_i32_0 = arith.constant 0 : i32
    return %arg1, %c0_i32 : i32, i32
  }
  func.func @transform_2(%arg0: i32, %arg1: i32) -> (i32, i32) {
    %c0_i32 = arith.constant 0 : i32
    %c0_i32_0 = arith.constant 0 : i32
    return %arg0, %c0_i32 : i32, i32
  }
}

</mosaic_0001>

<bundles_post_ra>
// kernel: tpu_custom_call.1
= control target key start
LH: loop header
LB: loop body
LE: loop exit
PB: predicated region body
PF: predicated region fallthrough
CT: control target
= control target key end

     0   :  { %7 = vsyncpa [#allocation4], 0  ;;  %s2112_s0 = inlined_call_operand.vmem [shape: f32[2048,72], index: 0, kind: input, shape index: {}]   ;;  %s2113_s1 = inlined_call_operand.vmem [shape: f32[72,128], index: 1, kind: input, shape index: {}]   ;;  %s2114_s2 = inlined_call_operand.hbm [shape: f32[2048,128], index: 2, kind: output, shape index: {}]  }
   0x1   :  { %9 = vsyncpa [#allocation4 + $0x1], 0  ;;  %s1771_s9 = smov 0   ;;  %s1773_s10 = smov 0  }
   0x2   :  { %s1775_s11 = smov 0   ;;  %s1777_s12 = smov 0  }
   0x3   :  { %s1779_s13 = smov 0   ;;  %s1781_s14 = smov 0  }
   0x4 LB: > { %s1334_s15 = sadd.s32 4294967295, %s1751_s14   ;;  %s1335_s16 = sadd.s32 4294967294, %s1751_s14   ;;  %s1751_s14 = sphi %s1781_s14, %s15_s14   ;;  %s1747_s13 = sphi %s1779_s13, %s2121_s13   ;;  %s1743_s12 = sphi %s1777_s12, %s2120_s12   ;;  %s1739_s11 = sphi %s1775_s11, %s2119_s11   ;;  %s1735_s10 = sphi %s1773_s10, %s2118_s10   ;;  %s1731_s9 = sphi %s1771_s9, %s2117_s9  }
   0x5   : > { %s27_s17 = sadd.s32 1, %s1747_s13  ;;  %s88_s18 = sadd.s32 1, %s1739_s11 }
   0x6   : > { %p29_p0 = scmp.ge.s32.totalorder %s27_s17, 4  ;;  %p98_p1 = scmp.ne.s32.totalorder %s1739_s11, %s1735_s10 }
   0x7   : > { %p99_p2 = scmp.eq.s32.totalorder %s1334_s15, 3  ;;  %p104_p3 = scmp.ne.s32.totalorder %s1735_s10, %s1731_s9 }
   0x8   : > { %s2123_s17 = smov (%p29_p0, %s27_s17), 0  ;;  %p105_p5 = scmp.eq.s32.totalorder %s1335_s16, 3 }
   0x9   : > { %p1811_p4 = por %p99_p2, %p98_p1  ;;  %s85_s20 = ssub.s32 %s1747_s13, %s2123_s17 }
   0xa   : > { %p1339_p6 = scmp.ge.s32.totalorder %s1751_s14, 1  ;;  %p86_p7 = scmp.eq.s32.totalorder %s85_s20, 0 }
   0xb   : > { %p1818_p8 = por %p105_p5, %p104_p3  ;;  %p144_p9 = scmp.lt.s32.totalorder %s1751_s14, 5 }
   0xc   : > { %s1824_s22 = scalar_select %p86_p7, %s1739_s11, %s88_s18  }
   0xd   : > { %p145_p10 = pnand %p1339_p6, %p144_p9 }
   0xe   : > { %s1341_s27 = sshll.u32 (!%p145_p10), %s1743_s12, 6  ;;  %s171_s28 = sand.u32 (!%p145_p10), 1, %s1735_s10  }
   0xf   : > { %148 = sbr.rel (%p145_p10) target bundleno = 309 (0x135), region = 28  ;;  %p175_p11 = scmp.lt.s32.totalorder (!%p145_p10), %s1341_s27, 255 }
  0x10   : > { %s1340_s29 = sshll.u32 (!%p145_p10), %s171_s28, 9  ;;  %s1412_s3 = sshll.u32 (!%p145_p10), %s1743_s12, 13 }
  0x11   : > { %s1990_s30 = scalar_lea.vmem (!%p145_p10), [#allocation3], %s1340_s29  ;;  %s2057_s7 = scalar_lea.hbm (!%p145_p10), %s2114_s2, %s1412_s3 }
  0x12   : > { %s1246_s4 = sshll.u32 (!%p145_p10), %s1990_s30, 4  ;;  %s2067_s12 = scalar_lea.sflag (!%p145_p10), [#allocation4], %s171_s28  ;;  %s2059_s4 = int_to_ptr.vmem [resolvable:$true] %s1246_s4 }
  0x13   : > { %s1675_s8 = scalar_lea.vmem (!%p145_p10), %s2059_s4, 8192  ;;  %s1753_s15 = smov (!%p145_p10), [#allocation3]  }
  0x14   : > { %v394_v0 = vld [vmem:[%s2113_s1 + $0x40] sm:$0xff]  ;;  %v393_v1 = vld [vmem:[%s2113_s1 + $0x38] sm:$0xff]  ;;  %v392_v2 = vld [vmem:[%s2113_s1 + $0x30] sm:$0xff]  ;;  %s2125_s27 = smov (!%p175_p11, %s1341_s27), 255  ;;  %vm395_vm0 = vcmask 588800   ;;  %p1676_p12 = scmp.ne.s32.totalorder %s2059_s4, %s1675_s8 }
  0x15   : > { %1486 = vmatprep.subr.mxu0 %v394_v0  ;;  %1600 = vmatprep.subr.mxu1 %v394_v0  ;;  %v391_v3 = vld [vmem:[%s2113_s1 + $0x28] sm:$0xff]  ;;  %v390_v4 = vld [vmem:[%s2113_s1 + $0x20] sm:$0xff]  ;;  %v389_v5 = vld [vmem:[%s2113_s1 + $0x18] sm:$0xff]  ;;  %s1342_s16 = sshll.u32 %s2125_s27, 3 }
  0x16   : > { %1487 = vmatpush3.msra.mxu0 %v394_v0  ;;  %1609 = vmatpush3.msra.mxu1 %v394_v0  ;;  %v388_v6 = vld [vmem:[%s2113_s1 + $0x10] sm:$0xff]  ;;  %v387_v7 = vld [vmem:[%s2113_s1 + $0x8] sm:$0xff]  ;;  %s1854_s25 = scalar_lea.vmem %s2112_s0, %s1342_s16  ;;  %v386_v8 = vld [vmem:[%s2113_s1] sm:$0xff]  ;;  %p1677_p13 = pnand %p1676_p12, %p1811_p4 }
  0x17   : > { %1488 = vmatprep.subr.mxu0 %v393_v1  ;;  %1601 = vmatprep.subr.mxu1 %v393_v1  ;;  %v322_v9 = vld [vmem:[%s1854_s25] sm:$0xff]  ;;  %v323_v11 = vld [vmem:[%s1854_s25 + $0x8] sm:$0xff]  ;;  %v324_v13 = vld [vmem:[%s1854_s25 + $0x10] sm:$0xff]  ;;  %s1679_s16 = sshll.u32 %s1753_s15, 4  ;;  %s1680_s16 = int_to_ptr.vmem [resolvable:$false] %s1679_s16 }
  0x18   : > { %1489 = vmatpush3.msra.mxu0 %v393_v1  ;;  %1610 = vmatpush3.msra.mxu1 %v393_v1  ;;  %v354_v10 = vld [vmem:[%s1854_s25 + $0x100] sm:$0xff]  ;;  %v355_v12 = vld [vmem:[%s1854_s25 + $0x108] sm:$0xff]  ;;  %v356_v14 = vld [vmem:[%s1854_s25 + $0x110] sm:$0xff]  ;;  %p1678_p0 = pneg %p1677_p13  ;;  %s1681_s18 = scalar_lea.vmem %s1680_s16, 16384 }
  0x19   : > { %1490 = vmatprep.subr.mxu0 %v392_v2  ;;  %1602 = vmatprep.subr.mxu1 %v392_v2  ;;  %v325_v15 = vld [vmem:[%s1854_s25 + $0x18] sm:$0xff]  ;;  %v326_v17 = vld [vmem:[%s1854_s25 + $0x20] sm:$0xff]  ;;  %v327_v19 = vld [vmem:[%s1854_s25 + $0x28] sm:$0xff]  ;;  %p1682_p1 = scmp.lt.s32.totalorder %s2059_s4, %s1680_s16  ;;  %p1683_p2 = scmp.lt.s32.totalorder %s1681_s18, %s1675_s8 }
  0x1a   : > { %1491 = vmatpush3.msra.mxu0 %v392_v2  ;;  %1611 = vmatpush3.msra.mxu1 %v392_v2  ;;  %v357_v16 = vld [vmem:[%s1854_s25 + $0x118] sm:$0xff]  ;;  %v358_v18 = vld [vmem:[%s1854_s25 + $0x120] sm:$0xff]  ;;  %v359_v20 = vld [vmem:[%s1854_s25 + $0x128] sm:$0xff] }
  0x1b   : > { %1492 = vmatprep.subr.mxu0 %v391_v3  ;;  %1603 = vmatprep.subr.mxu1 %v391_v3  ;;  %v328_v21 = vld [vmem:[%s1854_s25 + $0x30] sm:$0xff]  ;;  %v329_v23 = vld [vmem:[%s1854_s25 + $0x38] sm:$0xff]  ;;  %v330_v25 = vld [vmem:[%s1854_s25 + $0x40] sm:$0xff]  ;;  %p1684_p3 = por %p1683_p2, %p1682_p1 }
  0x1c   : > { %1493 = vmatpush3.msra.mxu0 %v391_v3  ;;  %1612 = vmatpush3.msra.mxu1 %v391_v3  ;;  %v360_v22 = vld [vmem:[%s1854_s25 + $0x130] sm:$0xff]  ;;  %v361_v24 = vld [vmem:[%s1854_s25 + $0x138] sm:$0xff]  ;;  %v362_v26 = vld [vmem:[%s1854_s25 + $0x140] sm:$0xff] }
  0x1d   : > { %1494 = vmatprep.subr.mxu0 %v390_v4  ;;  %1604 = vmatprep.subr.mxu1 %v390_v4  ;;  %v331_v27 = vld [vmem:[%s1854_s25 + $0x48] sm:$0xff]  ;;  %v332_v29 = vld [vmem:[%s1854_s25 + $0x50] sm:$0xff]  ;;  %v333_v31 = vld [vmem:[%s1854_s25 + $0x58] sm:$0xff]  ;;  %p1685_p5 = pnand %p1684_p3, %p1678_p0 }
  0x1e   : > { %1495 = vmatpush3.msra.mxu0 %v390_v4  ;;  %1613 = vmatpush3.msra.mxu1 %v390_v4  ;;  %v363_v28 = vld [vmem:[%s1854_s25 + $0x148] sm:$0xff]  ;;  %v364_v30 = vld [vmem:[%s1854_s25 + $0x150] sm:$0xff]  ;;  %v365_v32 = vld [vmem:[%s1854_s25 + $0x158] sm:$0xff] }
  0x1f   : > { %1496 = vmatprep.subr.mxu0 %v389_v5  ;;  %1605 = vmatprep.subr.mxu1 %v389_v5  ;;  %v334_v33 = vld [vmem:[%s1854_s25 + $0x60] sm:$0xff]  ;;  %v335_v35 = vld [vmem:[%s1854_s25 + $0x68] sm:$0xff]  ;;  %v336_v37 = vld [vmem:[%s1854_s25 + $0x70] sm:$0xff] }
  0x20   : > { %1497 = vmatpush3.msra.mxu0 %v389_v5  ;;  %1614 = vmatpush3.msra.mxu1 %v389_v5  ;;  %v366_v34 = vld [vmem:[%s1854_s25 + $0x160] sm:$0xff]  ;;  %v367_v36 = vld [vmem:[%s1854_s25 + $0x168] sm:$0xff]  ;;  %v368_v38 = vld [vmem:[%s1854_s25 + $0x170] sm:$0xff] }
  0x21   : > { %1498 = vmatprep.subr.mxu0 %v388_v6  ;;  %1606 = vmatprep.subr.mxu1 %v388_v6  ;;  %v337_v39 = vld [vmem:[%s1854_s25 + $0x78] sm:$0xff]  ;;  %v338_v41 = vld [vmem:[%s1854_s25 + $0x80] sm:$0xff]  ;;  %v339_v43 = vld [vmem:[%s1854_s25 + $0x88] sm:$0xff] }
  0x22   : > { %1499 = vmatpush3.msra.mxu0 %v388_v6  ;;  %1615 = vmatpush3.msra.mxu1 %v388_v6  ;;  %v369_v40 = vld [vmem:[%s1854_s25 + $0x178] sm:$0xff]  ;;  %v370_v42 = vld [vmem:[%s1854_s25 + $0x180] sm:$0xff]  ;;  %v371_v44 = vld [vmem:[%s1854_s25 + $0x188] sm:$0xff] }
  0x23   : > { %1500 = vmatprep.subr.mxu0 %v387_v7  ;;  %1607 = vmatprep.subr.mxu1 %v387_v7  ;;  %v340_v45 = vld [vmem:[%s1854_s25 + $0x90] sm:$0xff]  ;;  %v341_v47 = vld [vmem:[%s1854_s25 + $0x98] sm:$0xff]  ;;  %v342_v49 = vld [vmem:[%s1854_s25 + $0xa0] sm:$0xff] }
  0x24   : > { %1501 = vmatpush3.msra.mxu0 %v387_v7  ;;  %1616 = vmatpush3.msra.mxu1 %v387_v7  ;;  %v372_v46 = vld [vmem:[%s1854_s25 + $0x190] sm:$0xff]  ;;  %v373_v48 = vld [vmem:[%s1854_s25 + $0x198] sm:$0xff]  ;;  %v374_v50 = vld [vmem:[%s1854_s25 + $0x1a0] sm:$0xff] }
  0x25   : > { %1502 = vmatprep.subr.mxu0 %v386_v8  ;;  %1608 = vmatprep.subr.mxu1 %v386_v8  ;;  %v343_v51 = vld [vmem:[%s1854_s25 + $0xa8] sm:$0xff]  ;;  %v344_v53 = vld [vmem:[%s1854_s25 + $0xb0] sm:$0xff]  ;;  %v345_v55 = vld [vmem:[%s1854_s25 + $0xb8] sm:$0xff] }
  0x26   : > { %1503 = vmatpush3.msra.mxu0 %v386_v8  ;;  %1617 = vmatpush3.msra.mxu1 %v386_v8  ;;  %v375_v52 = vld [vmem:[%s1854_s25 + $0x1a8] sm:$0xff]  ;;  %v376_v54 = vld [vmem:[%s1854_s25 + $0x1b0] sm:$0xff]  ;;  %v377_v56 = vld [vmem:[%s1854_s25 + $0x1b8] sm:$0xff] }
  0x27   : > { %1504 = vmatprep.mubr.msk.f32.mxu0 %vm395_vm0, %v322_v9  ;;  %1552 = vmatprep.mubr.msk.f32.mxu1 %vm395_vm0, %v354_v10  ;;  %v346_v57 = vld [vmem:[%s1854_s25 + $0xc0] sm:$0xff]  ;;  %v347_v59 = vld [vmem:[%s1854_s25 + $0xc8] sm:$0xff]  ;;  %v348_v61 = vld [vmem:[%s1854_s25 + $0xd0] sm:$0xff] }
  0x28   : > { %1505 = vmatmul.mubr.msk.f32.vlgmr.msra.gmra.mxu0 %vm395_vm0, %v323_v11  ;;  %1553 = vmatmul.mubr.msk.f32.vlgmr.msra.gmra.mxu1 %vm395_vm0, %v355_v12  ;;  %v378_v58 = vld [vmem:[%s1854_s25 + $0x1c0] sm:$0xff]  ;;  %v379_v60 = vld [vmem:[%s1854_s25 + $0x1c8] sm:$0xff]  ;;  %v380_v62 = vld [vmem:[%s1854_s25 + $0x1d0] sm:$0xff] }
  0x29   : > { %1507 = vmatprep.mubr.msk.f32.mxu0 %vm395_vm0, %v324_v13  ;;  %1555 = vmatprep.mubr.msk.f32.mxu1 %vm395_vm0, %v356_v14  ;;  %v349_v63 = vld [vmem:[%s1854_s25 + $0xd8] sm:$0xff]  ;;  %v350_v1 = vld [vmem:[%s1854_s25 + $0xe0] sm:$0xff]  ;;  %v351_v3 = vld [vmem:[%s1854_s25 + $0xe8] sm:$0xff] }
  0x2a   : > { %v381_v0 = vld [vmem:[%s1854_s25 + $0x1d8] sm:$0xff]  ;;  %v382_v2 = vld [vmem:[%s1854_s25 + $0x1e0] sm:$0xff]  ;;  %v383_v4 = vld [vmem:[%s1854_s25 + $0x1e8] sm:$0xff] }
  0x2b   : > { %v352_v5 = vld [vmem:[%s1854_s25 + $0xf0] sm:$0xff]  ;;  %v353_v7 = vld [vmem:[%s1854_s25 + $0xf8] sm:$0xff] }
  0x2c   : > { %1508 = vmatmul.mubr.msk.f32.gmra.mxu0 %vm395_vm0, %v325_v15  ;;  %1556 = vmatmul.mubr.msk.f32.gmra.mxu1 %vm395_vm0, %v357_v16  ;;  %v384_v6 = vld [vmem:[%s1854_s25 + $0x1f0] sm:$0xff]  ;;  %v385_v8 = vld [vmem:[%s1854_s25 + $0x1f8] sm:$0xff] }
  0x2d   : > { %1510 = vmatprep.mubr.msk.f32.mxu0 %vm395_vm0, %v326_v17  ;;  %1558 = vmatprep.mubr.msk.f32.mxu1 %vm395_vm0, %v358_v18 }
  0x30   : > { %1511 = vmatmul.mubr.msk.f32.gmra.mxu0 %vm395_vm0, %v327_v19  ;;  %1559 = vmatmul.mubr.msk.f32.gmra.mxu1 %vm395_vm0, %v359_v20 }
  0x31   : > { %1513 = vmatprep.mubr.msk.f32.mxu0 %vm395_vm0, %v328_v21  ;;  %1561 = vmatprep.mubr.msk.f32.mxu1 %vm395_vm0, %v360_v22 }
  0x34   : > { %1514 = vmatmul.mubr.msk.f32.gmra.mxu0 %vm395_vm0, %v329_v23  ;;  %1562 = vmatmul.mubr.msk.f32.gmra.mxu1 %vm395_vm0, %v361_v24 }
  0x35   : > { %1516 = vmatprep.mubr.msk.f32.mxu0 %vm395_vm0, %v330_v25  ;;  %1564 = vmatprep.mubr.msk.f32.mxu1 %vm395_vm0, %v362_v26 }
  0x38   : > { %1517 = vmatmul.mubr.msk.f32.gmra.mxu0 %vm395_vm0, %v331_v27  ;;  %1565 = vmatmul.mubr.msk.f32.gmra.mxu1 %vm395_vm0, %v363_v28 }
  0x39   : > { %1519 = vmatprep.mubr.msk.f32.mxu0 %vm395_vm0, %v332_v29  ;;  %1567 = vmatprep.mubr.msk.f32.mxu1 %vm395_vm0, %v364_v30 }
  0x3c   : > { %1520 = vmatmul.mubr.msk.f32.gmra.mxu0 %vm395_vm0, %v333_v31  ;;  %1568 = vmatmul.mubr.msk.f32.gmra.mxu1 %vm395_vm0, %v365_v32 }
  0x3d   : > { %1522 = vmatprep.mubr.msk.f32.mxu0 %vm395_vm0, %v334_v33  ;;  %1570 = vmatprep.mubr.msk.f32.mxu1 %vm395_vm0, %v366_v34 }
  0x40   : > { %1523 = vmatmul.mubr.msk.f32.gmra.mxu0 %vm395_vm0, %v335_v35  ;;  %1571 = vmatmul.mubr.msk.f32.gmra.mxu1 %vm395_vm0, %v367_v36 }
  0x41   : > { %1525 = vmatprep.mubr.msk.f32.mxu0 %vm395_vm0, %v336_v37  ;;  %1573 = vmatprep.mubr.msk.f32.mxu1 %vm395_vm0, %v368_v38 }
  0x44   : > { %1526 = vmatmul.mubr.msk.f32.gmra.mxu0 %vm395_vm0, %v337_v39  ;;  %1574 = vmatmul.mubr.msk.f32.gmra.mxu1 %vm395_vm0, %v369_v40 }
  0x45   : > { %1528 = vmatprep.mubr.msk.f32.mxu0 %vm395_vm0, %v338_v41  ;;  %1576 = vmatprep.mubr.msk.f32.mxu1 %vm395_vm0, %v370_v42 }
  0x48   : > { %1529 = vmatmul.mubr.msk.f32.gmra.mxu0 %vm395_vm0, %v339_v43  ;;  %1577 = vmatmul.mubr.msk.f32.gmra.mxu1 %vm395_vm0, %v371_v44 }
  0x49   : > { %1531 = vmatprep.mubr.msk.f32.mxu0 %vm395_vm0, %v340_v45  ;;  %1579 = vmatprep.mubr.msk.f32.mxu1 %vm395_vm0, %v372_v46 }
  0x4c   : > { %1532 = vmatmul.mubr.msk.f32.gmra.mxu0 %vm395_vm0, %v341_v47  ;;  %1580 = vmatmul.mubr.msk.f32.gmra.mxu1 %vm395_vm0, %v373_v48 }
  0x4d   : > { %1534 = vmatprep.mubr.msk.f32.mxu0 %vm395_vm0, %v342_v49  ;;  %1582 = vmatprep.mubr.msk.f32.mxu1 %vm395_vm0, %v374_v50 }
  0x50   : > { %1535 = vmatmul.mubr.msk.f32.gmra.mxu0 %vm395_vm0, %v343_v51  ;;  %1583 = vmatmul.mubr.msk.f32.gmra.mxu1 %vm395_vm0, %v375_v52 }
  0x51   : > { %1537 = vmatprep.mubr.msk.f32.mxu0 %vm395_vm0, %v344_v53  ;;  %1585 = vmatprep.mubr.msk.f32.mxu1 %vm395_vm0, %v376_v54 }
  0x54   : > { %1538 = vmatmul.mubr.msk.f32.gmra.mxu0 %vm395_vm0, %v345_v55  ;;  %1586 = vmatmul.mubr.msk.f32.gmra.mxu1 %vm395_vm0, %v377_v56 }
  0x55   : > { %1540 = vmatprep.mubr.msk.f32.mxu0 %vm395_vm0, %v346_v57  ;;  %1588 = vmatprep.mubr.msk.f32.mxu1 %vm395_vm0, %v378_v58 }
  0x58   : > { %1541 = vmatmul.mubr.msk.f32.gmra.mxu0 %vm395_vm0, %v347_v59  ;;  %1589 = vmatmul.mubr.msk.f32.gmra.mxu1 %vm395_vm0, %v379_v60 }
  0x59   : > { %1543 = vmatprep.mubr.msk.f32.mxu0 %vm395_vm0, %v348_v61  ;;  %1591 = vmatprep.mubr.msk.f32.mxu1 %vm395_vm0, %v380_v62 }
  0x5c   : > { %1544 = vmatmul.mubr.msk.f32.gmra.mxu0 %vm395_vm0, %v349_v63  ;;  %1592 = vmatmul.mubr.msk.f32.gmra.mxu1 %vm395_vm0, %v381_v0 }
  0x5d   : > { %1546 = vmatprep.mubr.msk.f32.mxu0 %vm395_vm0, %v350_v1  ;;  %1594 = vmatprep.mubr.msk.f32.mxu1 %vm395_vm0, %v382_v2 }
  0x60   : > { %1547 = vmatmul.mubr.msk.f32.gmra.mxu0 %vm395_vm0, %v351_v3  ;;  %1595 = vmatmul.mubr.msk.f32.gmra.mxu1 %vm395_vm0, %v383_v4 }
  0x61   : > { %1549 = vmatprep.mubr.msk.f32.mxu0 %vm395_vm0, %v352_v5  ;;  %1597 = vmatprep.mubr.msk.f32.mxu1 %vm395_vm0, %v384_v6 }
  0x64   : > { %1550 = vmatmul.mubr.msk.f32.gmra.mxu0 %vm395_vm0, %v353_v7  ;;  %1598 = vmatmul.mubr.msk.f32.gmra.mxu1 %vm395_vm0, %v385_v8 }
  0xe8   : > { %v1506_v9 = vpop.f32.mrf.mxu0  ;;  %v1554_v10 = vpop.f32.mrf.mxu1 }
  0xe9   : > { %1169 = vst [vmem:[%s1990_s30 + $0x8] sm:$0xff] %v1506_v9  ;;  %1201 = vst [vmem:[%s1990_s30 + $0x108] sm:$0xff] %v1554_v10 }
  0xea   : > { %v654_v11 = vpop.f32.mrf.mxu0  ;;  %v814_v12 = vpop.f32.mrf.mxu1 }
  0xeb   : > { %1168 = vst [vmem:[%s1990_s30] sm:$0xff] %v654_v11  ;;  %1200 = vst [vmem:[%s1990_s30 + $0x100] sm:$0xff] %v814_v12 }
  0xec   : > { %v1509_v13 = vpop.f32.mrf.mxu0  ;;  %v1557_v14 = vpop.f32.mrf.mxu1 }
  0xed   : > { %1171 = vst [vmem:[%s1990_s30 + $0x18] sm:$0xff] %v1509_v13  ;;  %1203 = vst [vmem:[%s1990_s30 + $0x118] sm:$0xff] %v1557_v14 }
  0xee   : > { %v664_v15 = vpop.f32.mrf.mxu0  ;;  %v824_v16 = vpop.f32.mrf.mxu1 }
  0xef   : > { %1170 = vst [vmem:[%s1990_s30 + $0x10] sm:$0xff] %v664_v15  ;;  %1202 = vst [vmem:[%s1990_s30 + $0x110] sm:$0xff] %v824_v16 }
  0xf0   : > { %v1512_v17 = vpop.f32.mrf.mxu0  ;;  %v1560_v18 = vpop.f32.mrf.mxu1 }
  0xf1   : > { %1173 = vst [vmem:[%s1990_s30 + $0x28] sm:$0xff] %v1512_v17  ;;  %1205 = vst [vmem:[%s1990_s30 + $0x128] sm:$0xff] %v1560_v18 }
  0xf2   : > { %v674_v19 = vpop.f32.mrf.mxu0  ;;  %v834_v20 = vpop.f32.mrf.mxu1 }
  0xf3   : > { %1172 = vst [vmem:[%s1990_s30 + $0x20] sm:$0xff] %v674_v19  ;;  %1204 = vst [vmem:[%s1990_s30 + $0x120] sm:$0xff] %v834_v20 }
  0xf4   : > { %v1515_v21 = vpop.f32.mrf.mxu0  ;;  %v1563_v22 = vpop.f32.mrf.mxu1 }
  0xf5   : > { %1175 = vst [vmem:[%s1990_s30 + $0x38] sm:$0xff] %v1515_v21  ;;  %1207 = vst [vmem:[%s1990_s30 + $0x138] sm:$0xff] %v1563_v22 }
  0xf6   : > { %v684_v23 = vpop.f32.mrf.mxu0  ;;  %v844_v24 = vpop.f32.mrf.mxu1 }
  0xf7   : > { %1174 = vst [vmem:[%s1990_s30 + $0x30] sm:$0xff] %v684_v23  ;;  %1206 = vst [vmem:[%s1990_s30 + $0x130] sm:$0xff] %v844_v24 }
  0xf8   : > { %v1518_v25 = vpop.f32.mrf.mxu0  ;;  %v1566_v26 = vpop.f32.mrf.mxu1 }
  0xf9   : > { %1177 = vst [vmem:[%s1990_s30 + $0x48] sm:$0xff] %v1518_v25  ;;  %1209 = vst [vmem:[%s1990_s30 + $0x148] sm:$0xff] %v1566_v26 }
  0xfa   : > { %v694_v27 = vpop.f32.mrf.mxu0  ;;  %v854_v28 = vpop.f32.mrf.mxu1 }
  0xfb   : > { %1176 = vst [vmem:[%s1990_s30 + $0x40] sm:$0xff] %v694_v27  ;;  %1208 = vst [vmem:[%s1990_s30 + $0x140] sm:$0xff] %v854_v28 }
  0xfc   : > { %v1521_v29 = vpop.f32.mrf.mxu0  ;;  %v1569_v30 = vpop.f32.mrf.mxu1 }
  0xfd   : > { %1179 = vst [vmem:[%s1990_s30 + $0x58] sm:$0xff] %v1521_v29  ;;  %1211 = vst [vmem:[%s1990_s30 + $0x158] sm:$0xff] %v1569_v30 }
  0xfe   : > { %v704_v31 = vpop.f32.mrf.mxu0  ;;  %v864_v32 = vpop.f32.mrf.mxu1 }
  0xff   : > { %1178 = vst [vmem:[%s1990_s30 + $0x50] sm:$0xff] %v704_v31  ;;  %1210 = vst [vmem:[%s1990_s30 + $0x150] sm:$0xff] %v864_v32 }
 0x100   : > { %v1524_v33 = vpop.f32.mrf.mxu0  ;;  %v1572_v34 = vpop.f32.mrf.mxu1 }
 0x101   : > { %1181 = vst [vmem:[%s1990_s30 + $0x68] sm:$0xff] %v1524_v33  ;;  %1213 = vst [vmem:[%s1990_s30 + $0x168] sm:$0xff] %v1572_v34 }
 0x102   : > { %v714_v35 = vpop.f32.mrf.mxu0  ;;  %v874_v36 = vpop.f32.mrf.mxu1 }
 0x103   : > { %1180 = vst [vmem:[%s1990_s30 + $0x60] sm:$0xff] %v714_v35  ;;  %1212 = vst [vmem:[%s1990_s30 + $0x160] sm:$0xff] %v874_v36 }
 0x104   : > { %v1527_v37 = vpop.f32.mrf.mxu0  ;;  %v1575_v38 = vpop.f32.mrf.mxu1 }
 0x105   : > { %1183 = vst [vmem:[%s1990_s30 + $0x78] sm:$0xff] %v1527_v37  ;;  %1215 = vst [vmem:[%s1990_s30 + $0x178] sm:$0xff] %v1575_v38 }
 0x106   : > { %v724_v39 = vpop.f32.mrf.mxu0  ;;  %v884_v40 = vpop.f32.mrf.mxu1 }
 0x107   : > { %1182 = vst [vmem:[%s1990_s30 + $0x70] sm:$0xff] %v724_v39  ;;  %1214 = vst [vmem:[%s1990_s30 + $0x170] sm:$0xff] %v884_v40 }
 0x108   : > { %v1530_v41 = vpop.f32.mrf.mxu0  ;;  %v1578_v42 = vpop.f32.mrf.mxu1 }
 0x109   : > { %1185 = vst [vmem:[%s1990_s30 + $0x88] sm:$0xff] %v1530_v41  ;;  %1217 = vst [vmem:[%s1990_s30 + $0x188] sm:$0xff] %v1578_v42 }
 0x10a   : > { %v734_v43 = vpop.f32.mrf.mxu0  ;;  %v894_v44 = vpop.f32.mrf.mxu1 }
 0x10b   : > { %1184 = vst [vmem:[%s1990_s30 + $0x80] sm:$0xff] %v734_v43  ;;  %1216 = vst [vmem:[%s1990_s30 + $0x180] sm:$0xff] %v894_v44 }
 0x10c   : > { %v1533_v45 = vpop.f32.mrf.mxu0  ;;  %v1581_v46 = vpop.f32.mrf.mxu1 }
 0x10d   : > { %1187 = vst [vmem:[%s1990_s30 + $0x98] sm:$0xff] %v1533_v45  ;;  %1219 = vst [vmem:[%s1990_s30 + $0x198] sm:$0xff] %v1581_v46 }
 0x10e   : > { %v744_v47 = vpop.f32.mrf.mxu0  ;;  %v904_v48 = vpop.f32.mrf.mxu1 }
 0x10f   : > { %1186 = vst [vmem:[%s1990_s30 + $0x90] sm:$0xff] %v744_v47  ;;  %1218 = vst [vmem:[%s1990_s30 + $0x190] sm:$0xff] %v904_v48 }
 0x110   : > { %v1536_v49 = vpop.f32.mrf.mxu0  ;;  %v1584_v50 = vpop.f32.mrf.mxu1 }
 0x111   : > { %1189 = vst [vmem:[%s1990_s30 + $0xa8] sm:$0xff] %v1536_v49  ;;  %1221 = vst [vmem:[%s1990_s30 + $0x1a8] sm:$0xff] %v1584_v50 }
 0x112   : > { %v754_v51 = vpop.f32.mrf.mxu0  ;;  %v914_v52 = vpop.f32.mrf.mxu1 }
 0x113   : > { %1188 = vst [vmem:[%s1990_s30 + $0xa0] sm:$0xff] %v754_v51  ;;  %1220 = vst [vmem:[%s1990_s30 + $0x1a0] sm:$0xff] %v914_v52 }
 0x114   : > { %v1539_v53 = vpop.f32.mrf.mxu0  ;;  %v1587_v54 = vpop.f32.mrf.mxu1 }
 0x115   : > { %1191 = vst [vmem:[%s1990_s30 + $0xb8] sm:$0xff] %v1539_v53  ;;  %1223 = vst [vmem:[%s1990_s30 + $0x1b8] sm:$0xff] %v1587_v54 }
 0x116   : > { %v764_v55 = vpop.f32.mrf.mxu0  ;;  %v924_v56 = vpop.f32.mrf.mxu1 }
 0x117   : > { %1190 = vst [vmem:[%s1990_s30 + $0xb0] sm:$0xff] %v764_v55  ;;  %1222 = vst [vmem:[%s1990_s30 + $0x1b0] sm:$0xff] %v924_v56 }
 0x118   : > { %v1542_v57 = vpop.f32.mrf.mxu0  ;;  %v1590_v58 = vpop.f32.mrf.mxu1 }
 0x119   : > { %1193 = vst [vmem:[%s1990_s30 + $0xc8] sm:$0xff] %v1542_v57  ;;  %1225 = vst [vmem:[%s1990_s30 + $0x1c8] sm:$0xff] %v1590_v58 }
 0x11a   : > { %v774_v59 = vpop.f32.mrf.mxu0  ;;  %v934_v60 = vpop.f32.mrf.mxu1 }
 0x11b   : > { %1192 = vst [vmem:[%s1990_s30 + $0xc0] sm:$0xff] %v774_v59  ;;  %1224 = vst [vmem:[%s1990_s30 + $0x1c0] sm:$0xff] %v934_v60 }
 0x11c   : > { %v1545_v61 = vpop.f32.mrf.mxu0  ;;  %v1593_v62 = vpop.f32.mrf.mxu1 }
 0x11d   : > { %1195 = vst [vmem:[%s1990_s30 + $0xd8] sm:$0xff] %v1545_v61  ;;  %1227 = vst [vmem:[%s1990_s30 + $0x1d8] sm:$0xff] %v1593_v62 }
 0x11e   : > { %v784_v63 = vpop.f32.mrf.mxu0  ;;  %v944_v0 = vpop.f32.mrf.mxu1 }
 0x11f   : > { %1194 = vst [vmem:[%s1990_s30 + $0xd0] sm:$0xff] %v784_v63  ;;  %1226 = vst [vmem:[%s1990_s30 + $0x1d0] sm:$0xff] %v944_v0 }
 0x120   : > { %v1548_v1 = vpop.f32.mrf.mxu0  ;;  %v1596_v2 = vpop.f32.mrf.mxu1 }
 0x121   : > { %1197 = vst [vmem:[%s1990_s30 + $0xe8] sm:$0xff] %v1548_v1  ;;  %1229 = vst [vmem:[%s1990_s30 + $0x1e8] sm:$0xff] %v1596_v2 }
 0x122   : > { %v794_v3 = vpop.f32.mrf.mxu0  ;;  %v954_v4 = vpop.f32.mrf.mxu1 }
 0x123   : > { %1196 = vst [vmem:[%s1990_s30 + $0xe0] sm:$0xff] %v794_v3  ;;  %1228 = vst [vmem:[%s1990_s30 + $0x1e0] sm:$0xff] %v954_v4 }
 0x124   : > { %v1551_v5 = vpop.f32.mrf.mxu0  ;;  %v1599_v6 = vpop.f32.mrf.mxu1 }
 0x125   : > { %1199 = vst [vmem:[%s1990_s30 + $0xf8] sm:$0xff] %v1551_v5  ;;  %1231 = vst [vmem:[%s1990_s30 + $0x1f8] sm:$0xff] %v1599_v6 }
 0x126   : > { %v804_v7 = vpop.f32.mrf.mxu0  ;;  %v964_v8 = vpop.f32.mrf.mxu1 }
 0x127   : > { %1198 = vst [vmem:[%s1990_s30 + $0xf0] sm:$0xff] %v804_v7  ;;  %1230 = vst [vmem:[%s1990_s30 + $0x1f0] sm:$0xff] %v964_v8 }
 0x128   : > { %1688 = shalt.err (!%p1685_p5)
}
 0x129   : > { %s1689_s20 = scalar_lea.hbm %s2057_s7, 8192  ;;  %s1693_s25 = scalar_lea.hbm %s2114_s2, 32768 }
 0x12a   : > { %p1690_p6 = scmp.ne.s32.totalorder %s2057_s7, %s1689_s20  ;;  %p1694_p10 = scmp.lt.s32.totalorder %s2057_s7, %s2114_s2 }
 0x12b   : > { %p1695_p11 = scmp.lt.s32.totalorder %s1693_s25, %s1689_s20 }
 0x12c   : > { %p1691_p7 = pnand %p1690_p6, %p1811_p4 }
 0x12d   : > { %p1696_p12 = por %p1695_p11, %p1694_p10 }
 0x12e   : > { %p1692_p9 = pneg %p1691_p7 }
 0x130   : > { %p1697_p13 = pnand %p1696_p12, %p1692_p9 }
 0x132   : > { %1700 = shalt.err (!%p1697_p13)
}
 0x133   : > { %s1754_s28 = smov 128   ;;  %s1755_s29 = smov 8  }
 0x134   : > { %1618 = dma.vmem_to_hbm [thread:$0]  (%p1811_p4), %s2059_s4, 8192, %s2057_s7, %s2067_s12, %s1754_s28, %s1754_s28, %s1755_s29  }
 0x135 PF: > { %p1624_p0 = scmp.ge.s32.totalorder %s1751_s14, 2  ;;  %s1261_s30 = sand.u32 1, %s1731_s9  }
 0x136   : > { %s1262_s3 = scalar_lea.sflag [#allocation4], %s1261_s30 }
 0x137   : > { %p1621_p1 = pnand %p1624_p0, %p1818_p8 }
 0x139   : > { %p1622_p2 = pneg %p1621_p1 }
 0x13b   : > { %1726 = dma.done.wait (%p1622_p2), %s1262_s3, 8192  }
 0x13c   : > { %1728 = vsyncadd (%p1622_p2), %s1262_s3, 4294959104  ;;  %s15_s14 = sadd.s32 1, %s1751_s14   ;;  %s2117_s9 = smov %s1735_s10 }
 0x13d   : > { %p12_p3 = scmp.ge.s32.totalorder %s15_s14, 6   ;;  %s2118_s10 = smov %s1739_s11 }
 0x13e   : > { %s2119_s11 = smov %s1824_s22  ;;  %s2120_s12 = smov %s1747_s13 }
 0x13f   : > { %s2121_s13 = smov %s2123_s17  ;;  %14 = sbr.rel (!%p12_p3) target bundleno = 4 (0x4), region = 74 }
 0x144   :  { %1267 = vsyncpa [#allocation4], 1 }
 0x145   :  { %1269 = vsyncpa [#allocation4 + $0x1], 1 }

</bundles_post_ra>
